<compile_context>
chip_gen: v7x
topology: tpu7x:2x2x1
jax: 0.10.0
libtpu: 0.0.40
codegen_flags: <defaults>
</compile_context>

<pallas_src>
import math

import jax
import jax.numpy as jnp
from jax.experimental import pallas as pl
from jax.experimental.pallas import tpu as pltpu


def _round_up(x, m):
    return ((x + m - 1) // m) * m


def _cdiv(a, b):
    return (a + b - 1) // b


def _gelu_tanh(x):
    # GELU with tanh approximation, matching nn.GELU(approximate='tanh'); f32 math.
    c = math.sqrt(2.0 / math.pi)
    return 0.5 * x * (1.0 + jnp.tanh(c * (x + 0.044715 * x * x * x)))


# --------------------------------------------------------------------------- #
# Kernel: one row tile i, one hidden (K) block k.
#   h_k  = GELU(x @ w1[:, k] + b1[k])     (exact per hidden feature; no split)
#   acc += h_k @ w2[k, :]                 (f32 accumulator scratch)
#   out  = acc + b2                       (at the last k only -> one writeback)
# --------------------------------------------------------------------------- #
def mlp_kernel(x_ref, w1_ref, b1_ref, w2_ref, b2_ref, o_ref, acc_ref):
    k = pl.program_id(1)

    @pl.when(k == 0)
    def _init():
        acc_ref[...] = jnp.zeros_like(acc_ref)

    h = jnp.dot(x_ref[...], w1_ref[...],
                preferred_element_type=jnp.float32) + b1_ref[...]
    h = _gelu_tanh(h)                                            # f32
    acc_ref[...] += jnp.dot(h.astype(w2_ref.dtype), w2_ref[...],
                            preferred_element_type=jnp.float32)

    @pl.when(k == pl.num_programs(1) - 1)
    def _finalize():
        o_ref[...] = (acc_ref[...] + b2_ref[...]).astype(o_ref.dtype)


# --------------------------------------------------------------------------- #
# VMEM footprint models (bytes) and capacity query.
# --------------------------------------------------------------------------- #
def _stream_vmem_bytes(tm, tk, in_f, out_fp, xb, wb, ob):
    # Mode B: hidden dim streamed; weights double-buffered per K block.
    return (2 * tm * in_f * xb            # x row tile (double-buffered)
            + 2 * in_f * tk * wb          # w1[:, k]
            + 2 * tk * 4                  # b1[k] (f32)
            + 2 * tk * out_fp * wb        # w2[k, :]
            + 2 * out_fp * 4              # b2 (f32)
            + 2 * tm * out_fp * ob        # output tile
            + tm * out_fp * 4             # f32 accumulator scratch
            + 3 * tm * tk * 4)            # h (f32) + cast copy + temporaries


def _resident_vmem_bytes(tm, in_f, hid_p, out_fp, xb, wb, ob):
    # Mode A: all weights resident, single-buffered (pl.Buffered(1)).
    return ((in_f * hid_p + hid_p * out_fp) * wb
            + (hid_p + out_fp) * 4
            + 2 * tm * in_f * xb
            + 2 * tm * out_fp * ob
            + tm * out_fp * 4
            + 3 * tm * hid_p * 4)


def _vmem_capacity_bytes():
    try:
        return int(pltpu.get_tpu_info().vmem_capacity_bytes)
    except Exception:
        return 64 << 20   # conservative (v7x per-TensorCore) if the query fails


def _select_tiling(M, in_f, hid_p, out_fp, xb, wb, ob, tm_req, tk_req, budget):
    M8 = _round_up(max(M, 1), 8)

    # ---- Mode A: fully resident weights (single K block) -------------------
    tm = max(8, min(_round_up(tm_req, 8), M8))
    nt = _cdiv(M, tm)
    if nt >= 4 and _resident_vmem_bytes(tm, in_f, hid_p, out_fp, xb, wb, ob) <= budget:
        if nt % 2:                        # even tile count -> both v7x TCs busy
            nt += 1
            tm = max(8, _round_up(_cdiv(M, nt), 8))
        return tm, hid_p, True

    # ---- Mode B: stream the hidden dim --------------------------------------
    tk = max(128, min(_round_up(tk_req, 128), hid_p))
    tm = M8                               # fewest row tiles -> weight traffic ~1x
    while _stream_vmem_bytes(tm, tk, in_f, out_fp, xb, wb, ob) > budget:
        if tm > 256:
            tm = max(256, _round_up(tm // 2, 8))
        elif tk > 128:
            tk = max(128, _round_up(tk // 2, 128))
        elif tm > 64:
            tm = max(64, _round_up(tm // 2, 8))
        else:
            break
    nt = _cdiv(M, tm)
    if nt > 1 and nt % 2:
        nt += 1
        tm = max(8, _round_up(_cdiv(M, nt), 8))
    return tm, tk, False


def mlp_pallas(x2d, w1, b1, w2, b2, *, tm=256, tk=512, out_dtype=None):
    M, in_f = x2d.shape
    hid = w1.shape[1]
    out_f = w2.shape[1]
    out_dtype = jnp.dtype(out_dtype or x2d.dtype)

    # Lane-dense feature dims (zero padding is exact: GELU(0) == 0).
    hid_p = _round_up(hid, 128)
    out_fp = _round_up(out_f, 128)

    xb = jnp.dtype(x2d.dtype).itemsize
    wb = jnp.dtype(w1.dtype).itemsize
    ob = out_dtype.itemsize

    budget = _vmem_capacity_bytes() - (6 << 20)          # headroom for Mosaic
    tm, tk, resident = _select_tiling(M, in_f, hid_p, out_fp, xb, wb, ob,
                                      tm, tk, budget)
    nk = _cdiv(hid_p, tk)
    hid_p = nk * tk
    Mp = _round_up(M, tm)

    est = (_resident_vmem_bytes(tm, in_f, hid_p, out_fp, xb, wb, ob) if resident
           else _stream_vmem_bytes(tm, tk, in_f, out_fp, xb, wb, ob))
    vmem_limit = int(min(max(est + (4 << 20), 32 << 20), budget))

    # Zero-pad rows / hidden / output features (sliced off on the way out).
    if Mp != M:
        x2d = jnp.pad(x2d, ((0, Mp - M), (0, 0)))
    if hid_p != hid:
        w1 = jnp.pad(w1, ((0, 0), (0, hid_p - hid)))
    b1 = jnp.pad(b1.reshape(1, hid).astype(jnp.float32),
                 ((0, 0), (0, hid_p - hid)))
    if hid_p != hid or out_fp != out_f:
        w2 = jnp.pad(w2, ((0, hid_p - hid), (0, out_fp - out_f)))
    b2 = jnp.pad(b2.reshape(1, out_f).astype(jnp.float32),
                 ((0, 0), (0, out_fp - out_f)))

    # Weights / biases: single-buffer when resident (Mode A), default
    # double-buffering when streamed over K (Mode B).
    def wspec(shape, index_map):
        if resident:
            return pl.BlockSpec(shape, index_map, pipeline_mode=pl.Buffered(1))
        return pl.BlockSpec(shape, index_map)

    out = pl.pallas_call(
        mlp_kernel,
        out_shape=jax.ShapeDtypeStruct((Mp, out_fp), out_dtype),
        grid_spec=pltpu.PrefetchScalarGridSpec(
            num_scalar_prefetch=0,
            grid=(Mp // tm, nk),
            in_specs=[
                pl.BlockSpec((tm, in_f), lambda i, k: (i, 0)),   # x (reused across k)
                wspec((in_f, tk), lambda i, k: (0, k)),          # w1[:, k]
                wspec((1, tk), lambda i, k: (0, k)),             # b1[k]
                wspec((tk, out_fp), lambda i, k: (k, 0)),        # w2[k, :]
                wspec((1, out_fp), lambda i, k: (0, 0)),         # b2
            ],
            out_specs=pl.BlockSpec((tm, out_fp), lambda i, k: (i, 0)),
            scratch_shapes=[pltpu.VMEM((tm, out_fp), jnp.float32)],
        ),
        compiler_params=pltpu.CompilerParams(
            dimension_semantics=("parallel", "arbitrary"),
            vmem_limit_bytes=vmem_limit,
        ),
    )(x2d, w1, b1, w2, b2)
    return out[:M, :out_f]


def mlp_forward(x, w1, b1, w2, b2, *, tm=256, tk=512):
    # x: (..., in_features); applied over the last dim like nn.Linear.
    lead = x.shape[:-1]
    out_dtype = x.dtype
    # Cast in the wrapper: halves x DMA/VMEM when weights are bf16.
    x2d = x.reshape(-1, x.shape[-1]).astype(w1.dtype)
    y2d = mlp_pallas(x2d, w1, b1, w2, b2, tm=tm, tk=tk, out_dtype=out_dtype)
    return y2d.reshape(*lead, w2.shape[1])


def init_params(key, in_features, hidden_features, out_features,
                weight_dtype=jnp.float32):
    k1, k2, k3, k4 = jax.random.split(key, 4)
    # kaiming_normal_(mode='fan_in', nonlinearity='relu'): std = sqrt(2 / fan_in).
    w1 = (jax.random.normal(k1, (in_features, hidden_features), jnp.float32)
          * math.sqrt(2.0 / in_features)).astype(weight_dtype)
    w2 = (jax.random.normal(k2, (hidden_features, out_features), jnp.float32)
          * math.sqrt(2.0 / hidden_features)).astype(weight_dtype)
    # nn.Linear default bias init: U(-1/sqrt(fan_in), 1/sqrt(fan_in)); biases kept f32.
    b1 = jax.random.uniform(k3, (hidden_features,), jnp.float32,
                            -1.0 / math.sqrt(in_features),
                            1.0 / math.sqrt(in_features))
    b2 = jax.random.uniform(k4, (out_features,), jnp.float32,
                            -1.0 / math.sqrt(hidden_features),
                            1.0 / math.sqrt(hidden_features))
    return w1, b1, w2, b2


def _reference(x, w1, b1, w2, b2):
    # Plain-JAX reference with the same dtype handling as the kernel.
    h = (jnp.dot(x.astype(w1.dtype), w1, preferred_element_type=jnp.float32)
         + b1.astype(jnp.float32))
    h = _gelu_tanh(h)
    y = (jnp.dot(h.astype(w2.dtype), w2, preferred_element_type=jnp.float32)
         + b2.astype(jnp.float32))
    return y.astype(x.dtype)


if __name__ == "__main__":
    # Test 1: ragged token count + non-128-aligned features (exercises row /
    # hidden / output zero-padding), f32 weights, Mode B with a single K block.
    k1, k2 = jax.random.split(jax.random.PRNGKey(0))
    x = jax.random.normal(k1, (2, 9, 32), jnp.float32)              # M = 18
    p1 = init_params(k2, 32, 72, 48, weight_dtype=jnp.float32)
    y = mlp_forward(x, *p1)
    jax.block_until_ready(y)
    ref = _reference(x, *p1)
    assert y.shape == (2, 9, 48)
    assert jnp.allclose(y, ref, atol=1e-5, rtol=1e-5)

    # Test 2: bf16 weights with the hidden dim streamed over several K blocks
    # (Mode B, f32 accumulator across the "arbitrary" axis).
    k3, k4 = jax.random.split(jax.random.PRNGKey(1))
    x2 = jax.random.normal(k3, (2, 300, 128), jnp.float32)          # M = 600
    p2 = init_params(k4, 128, 512, 128, weight_dtype=jnp.bfloat16)
    y2 = mlp_forward(x2, *p2, tk=128)                               # nk = 4
    jax.block_until_ready(y2)
    ref2 = _reference(x2, *p2)
    assert y2.shape == (2, 300, 128)
    assert jnp.allclose(y2, ref2, atol=2e-2, rtol=2e-2)

    # Test 3: many row tiles -> resident single-buffered weights (Mode A).
    k5, k6 = jax.random.split(jax.random.PRNGKey(2))
    x3 = jax.random.normal(k5, (4, 256, 128), jnp.float32)          # M = 1024
    p3 = init_params(k6, 128, 256, 128, weight_dtype=jnp.bfloat16)
    y3 = mlp_forward(x3, *p3)
    jax.block_until_ready(y3)
    ref3 = _reference(x3, *p3)
    assert y3.shape == (4, 256, 128)
    assert jnp.allclose(y3, ref3, atol=2e-2, rtol=2e-2)

    print("KERNEL_OK")
</pallas_src>

<mosaic_0001>
module attributes {stable_mosaic.version = 11 : i64} {
  func.func @mlp_kernel(%arg0: i32, %arg1: i32, %arg2: memref<24x32xf32, #tpu.memory_space<vmem>>, %arg3: memref<32x128xf32, #tpu.memory_space<vmem>>, %arg4: memref<1x128xf32, #tpu.memory_space<vmem>>, %arg5: memref<128x128xf32, #tpu.memory_space<vmem>>, %arg6: memref<1x128xf32, #tpu.memory_space<vmem>>, %arg7: memref<24x128xf32, #tpu.memory_space<vmem>>, %arg8: memref<24x128xf32, #tpu.memory_space<vmem>>) attributes {dimension_semantics = [#tpu.dimension_semantics<parallel>, #tpu.dimension_semantics<arbitrary>], iteration_bounds = array<i64: 1, 1>, scalar_prefetch = 0 : i64, scratch_operands = 1 : i64, tpu.core_type = #tpu.core_type<tc>, window_params = [{transform_indices = @transform_0, window_bounds = array<i64: 24, 32>}, {transform_indices = @transform_1, window_bounds = array<i64: 32, 128>}, {transform_indices = @transform_2, window_bounds = array<i64: 1, 128>}, {transform_indices = @transform_3, window_bounds = array<i64: 128, 128>}, {pipeline_mode = #tpu.pipeline_mode<synchronous>, transform_indices = @transform_4, window_bounds = array<i64: 1, 128>}, {transform_indices = @transform_5, window_bounds = array<i64: 24, 128>}]} {
    %c0_i32 = arith.constant 0 : i32
    %0 = arith.cmpi eq, %arg1, %c0_i32 : i32
    %1 = arith.extui %0 : i1 to i32
    %c0_i32_0 = arith.constant 0 : i32
    %2 = arith.cmpi ne, %1, %c0_i32_0 : i32
    scf.if %2 {
      %cst_19 = arith.constant 0.000000e+00 : f32
      %30 = vector.broadcast %cst_19 : f32 to vector<24x128xf32>
      %c0_20 = arith.constant 0 : index
      %c0_21 = arith.constant 0 : index
      %31 = vector.load %arg8[%c0_20, %c0_21] : memref<24x128xf32, #tpu.memory_space<vmem>>, vector<24x128xf32>
      tpu.vector_store %arg8[%c0_20, %c0_21], %30 {strides = array<i32>} : memref<24x128xf32, #tpu.memory_space<vmem>>, vector<24x128xf32>,
    } else {
    }
    %c0 = arith.constant 0 : index
    %c0_1 = arith.constant 0 : index
    %3 = vector.load %arg2[%c0, %c0_1] : memref<24x32xf32, #tpu.memory_space<vmem>>, vector<24x32xf32>
    %c0_2 = arith.constant 0 : index
    %c0_3 = arith.constant 0 : index
    %4 = vector.load %arg3[%c0_2, %c0_3] : memref<32x128xf32, #tpu.memory_space<vmem>>, vector<32x128xf32>
    %cst = arith.constant dense<0.000000e+00> : vector<24x128xf32>
    %5 = tpu.matmul %3, %4, %cst {dimension_numbers = #tpu.dot_dimension_numbers<[1], [0], [0], [1], [0, 0, 1, 1], [], []>} : vector<24x32xf32>, vector<32x128xf32>, vector<24x128xf32> -> vector<24x128xf32>
    %c0_4 = arith.constant 0 : index
    %c0_5 = arith.constant 0 : index
    %6 = vector.load %arg4[%c0_4, %c0_5] : memref<1x128xf32, #tpu.memory_space<vmem>>, vector<1x128xf32>
    %7 = vector.broadcast %6 : vector<1x128xf32> to vector<24x128xf32>
    %8 = arith.addf %5, %7 : vector<24x128xf32>
    %cst_6 = arith.constant 5.000000e-01 : f32
    %9 = vector.broadcast %cst_6 : f32 to vector<24x128xf32>
    %10 = arith.mulf %9, %8 : vector<24x128xf32>
    %cst_7 = arith.constant 4.471500e-02 : f32
    %11 = vector.broadcast %cst_7 : f32 to vector<24x128xf32>
    %12 = arith.mulf %11, %8 : vector<24x128xf32>
    %13 = arith.mulf %12, %8 : vector<24x128xf32>
    %14 = arith.mulf %13, %8 : vector<24x128xf32>
    %15 = arith.addf %8, %14 : vector<24x128xf32>
    %cst_8 = arith.constant 0.797884583 : f32
    %16 = vector.broadcast %cst_8 : f32 to vector<24x128xf32>
    %17 = arith.mulf %16, %15 : vector<24x128xf32>
    %18 = math.tanh %17 : vector<24x128xf32>
    %cst_9 = arith.constant 1.000000e+00 : f32
    %19 = vector.broadcast %cst_9 : f32 to vector<24x128xf32>
    %20 = arith.addf %19, %18 : vector<24x128xf32>
    %21 = arith.mulf %10, %20 : vector<24x128xf32>
    %c0_10 = arith.constant 0 : index
    %c0_11 = arith.constant 0 : index
    %22 = vector.load %arg8[%c0_10, %c0_11] : memref<24x128xf32, #tpu.memory_space<vmem>>, vector<24x128xf32>
    %c0_12 = arith.constant 0 : index
    %c0_13 = arith.constant 0 : index
    %23 = vector.load %arg5[%c0_12, %c0_13] : memref<128x128xf32, #tpu.memory_space<vmem>>, vector<128x128xf32>
    %cst_14 = arith.constant dense<0.000000e+00> : vector<24x128xf32>
    %24 = tpu.matmul %21, %23, %cst_14 {dimension_numbers = #tpu.dot_dimension_numbers<[1], [0], [0], [1], [0, 0, 1, 1], [], []>} : vector<24x128xf32>, vector<128x128xf32>, vector<24x128xf32> -> vector<24x128xf32>
    %25 = arith.addf %22, %24 : vector<24x128xf32>
    %c0_15 = arith.constant 0 : index
    %c0_16 = arith.constant 0 : index
    %26 = vector.load %arg8[%c0_15, %c0_16] : memref<24x128xf32, #tpu.memory_space<vmem>>, vector<24x128xf32>
    tpu.vector_store %arg8[%c0_15, %c0_16], %25 {strides = array<i32>} : memref<24x128xf32, #tpu.memory_space<vmem>>, vector<24x128xf32>,
    %c0_i32_17 = arith.constant 0 : i32
    %27 = arith.cmpi eq, %arg1, %c0_i32_17 : i32
    %28 = arith.extui %27 : i1 to i32
    %c0_i32_18 = arith.constant 0 : i32
    %29 = arith.cmpi ne, %28, %c0_i32_18 : i32
    scf.if %29 {
      %c0_19 = arith.constant 0 : index
      %c0_20 = arith.constant 0 : index
      %30 = vector.load %arg8[%c0_19, %c0_20] : memref<24x128xf32, #tpu.memory_space<vmem>>, vector<24x128xf32>
      %c0_21 = arith.constant 0 : index
      %c0_22 = arith.constant 0 : index
      %31 = vector.load %arg6[%c0_21, %c0_22] : memref<1x128xf32, #tpu.memory_space<vmem>>, vector<1x128xf32>
      %32 = vector.broadcast %31 : vector<1x128xf32> to vector<24x128xf32>
      %33 = arith.addf %30, %32 : vector<24x128xf32>
      %c0_23 = arith.constant 0 : index
      %c0_24 = arith.constant 0 : index
      %34 = vector.load %arg7[%c0_23, %c0_24] : memref<24x128xf32, #tpu.memory_space<vmem>>, vector<24x128xf32>
      tpu.vector_store %arg7[%c0_23, %c0_24], %33 {strides = array<i32>} : memref<24x128xf32, #tpu.memory_space<vmem>>, vector<24x128xf32>,
    } else {
    }
    return
  }
  func.func @transform_0(%arg0: i32, %arg1: i32) -> (i32, i32) {
    %c0_i32 = arith.constant 0 : i32
    %c0_i32_0 = arith.constant 0 : i32
    return %arg0, %c0_i32 : i32, i32
  }
  func.func @transform_1(%arg0: i32, %arg1: i32) -> (i32, i32) {
    %c0_i32 = arith.constant 0 : i32
    %c0_i32_0 = arith.constant 0 : i32
    return %c0_i32, %arg1 : i32, i32
  }
  func.func @transform_2(%arg0: i32, %arg1: i32) -> (i32, i32) {
    %c0_i32 = arith.constant 0 : i32
    %c0_i32_0 = arith.constant 0 : i32
    return %c0_i32, %arg1 : i32, i32
  }
  func.func @transform_3(%arg0: i32, %arg1: i32) -> (i32, i32) {
    %c0_i32 = arith.constant 0 : i32
    %c0_i32_0 = arith.constant 0 : i32
    return %arg1, %c0_i32 : i32, i32
  }
  func.func @transform_4(%arg0: i32, %arg1: i32) -> (i32, i32) {
    %c0_i32 = arith.constant 0 : i32
    %c0_i32_0 = arith.constant 0 : i32
    %c0_i32_1 = arith.constant 0 : i32
    return %c0_i32, %c0_i32_0 : i32, i32
  }
  func.func @transform_5(%arg0: i32, %arg1: i32) -> (i32, i32) {
    %c0_i32 = arith.constant 0 : i32
    %c0_i32_0 = arith.constant 0 : i32
    return %arg0, %c0_i32 : i32, i32
  }
}

</mosaic_0001>

<bundles_post_ra>
// kernel: tpu_custom_call.1
= control target key start
LH: loop header
LB: loop body
LE: loop exit
PB: predicated region body
PF: predicated region fallthrough
CT: control target
= control target key end

     0   :  { %10 = vsyncpa [#allocation4], 0  ;;  %s694_s0 = inlined_call_operand.hbm [shape: f32[24,32], index: 0, kind: input, shape index: {}]   ;;  %s695_s1 = inlined_call_operand.hbm [shape: f32[32,128], index: 1, kind: input, shape index: {}]   ;;  %s696_s2 = inlined_call_operand.vmem [shape: f32[1,128], index: 2, kind: input, shape index: {}]   ;;  %s697_s3 = inlined_call_operand.hbm [shape: f32[128,128], index: 3, kind: input, shape index: {}]   ;;  %s698_s4 = inlined_call_operand.vmem [shape: f32[1,128], index: 4, kind: input, shape index: {}]   ;;  %s699_s5 = inlined_call_operand.hbm [shape: f32[24,128], index: 5, kind: output, shape index: {}]  }
   0x1   :  { %11 = vsyncpa [#allocation7], 0 }
   0x2   :  { %12 = vsyncpa [#allocation5], 0  ;;  %s570_s18 = smov [#allocation6]   ;;  %s571_s20 = smov [#allocation3]  }
   0x3   :  { %s30_s19 = sshll.u32 %s570_s18, 4  ;;  %s18_s21 = sshll.u32 %s571_s20, 4  ;;  %s31_s19 = int_to_ptr.vmem [resolvable:$true] %s30_s19  ;;  %s609_s21 = int_to_ptr.vmem [resolvable:$true] %s18_s21 }
   0x4   :  { %s476_s24 = scalar_lea.hbm %s695_s1, 512 }
   0x5   :  { %p477_p0 = scmp.ne.s32.totalorder %s695_s1, %s476_s24  ;;  %p480_p1 = scmp.lt.u32.totalorder %s476_s24, %s695_s1 }
   0x7   :  { %p482_p2 = pnand %p480_p1, %p477_p0 }
   0x9   :  { %485 = shalt.err (!%p482_p2)
}
   0xa   :  { %s486_s29 = scalar_lea.vmem %s31_s19, 512  ;;  %p491_p4 = scmp.lt.s32.totalorder %s31_s19, %s31_s19 }
   0xb   :  { %p487_p3 = scmp.ne.s32.totalorder %s31_s19, %s486_s29  ;;  %p492_p5 = scmp.lt.s32.totalorder %s486_s29, %s486_s29 }
   0xd   :  { %p493_p6 = por %p492_p5, %p491_p4 }
   0xf   :  { %p494_p7 = pnand %p493_p6, %p487_p3 }
  0x11   :  { %497 = shalt.err (!%p494_p7)
}
  0x12   :  { %s572_s30 = smov 128   ;;  %s573_s6 = smov 8  }
  0x13   :  { %36 = dma.hbm_to_vmem [thread:$0]  %s695_s1, 512, %s31_s19, [#allocation7], %s572_s30, %s572_s30, %s573_s6  }
  0x14   :  { %s498_s11 = scalar_lea.hbm %s694_s0, 384 }
  0x15   :  { %p499_p8 = scmp.ne.s32.totalorder %s694_s0, %s498_s11  ;;  %p502_p9 = scmp.lt.u32.totalorder %s498_s11, %s694_s0 }
  0x17   :  { %p504_p10 = pnand %p502_p9, %p499_p8 }
  0x19   :  { %507 = shalt.err (!%p504_p10)
}
  0x1a   :  { %s508_s16 = scalar_lea.vmem %s609_s21, 384  ;;  %p513_p12 = scmp.lt.s32.totalorder %s609_s21, %s609_s21 }
  0x1b   :  { %p509_p11 = scmp.ne.s32.totalorder %s609_s21, %s508_s16  ;;  %p514_p13 = scmp.lt.s32.totalorder %s508_s16, %s508_s16 }
  0x1d   :  { %p515_p0 = por %p514_p13, %p513_p12 }
  0x1f   :  { %p516_p1 = pnand %p515_p0, %p509_p11 }
  0x21   :  { %519 = shalt.err (!%p516_p1)
}
  0x22   :  { %24 = dma.hbm_to_vmem [thread:$0]  %s694_s0, 384, %s609_s21, [#allocation4], %s572_s30, %s572_s30, %s573_s6  }
  0x23   :  { %s574_s18 = smov [#allocation8]   ;;  %s520_s23 = scalar_lea.hbm %s697_s3, 2048 }
  0x24   :  { %s44_s19 = sshll.u32 %s574_s18, 4  ;;  %p521_p2 = scmp.ne.s32.totalorder %s697_s3, %s520_s23  ;;  %s45_s19 = int_to_ptr.vmem [resolvable:$true] %s44_s19 }
  0x25   :  { %p524_p3 = scmp.lt.u32.totalorder %s520_s23, %s697_s3 }
  0x27   :  { %p526_p4 = pnand %p524_p3, %p521_p2 }
  0x29   :  { %529 = shalt.err (!%p526_p4)
}
  0x2a   :  { %s530_s28 = scalar_lea.vmem %s45_s19, 2048  ;;  %p535_p6 = scmp.lt.s32.totalorder %s45_s19, %s45_s19 }
  0x2b   :  { %p531_p5 = scmp.ne.s32.totalorder %s45_s19, %s530_s28  ;;  %p536_p7 = scmp.lt.s32.totalorder %s530_s28, %s530_s28 }
  0x2d   :  { %p537_p8 = por %p536_p7, %p535_p6 }
  0x2f   :  { %p538_p9 = pnand %p537_p8, %p531_p5 }
  0x31   :  { %541 = shalt.err (!%p538_p9)
}
  0x32   :  { %50 = dma.hbm_to_vmem [thread:$0]  %s697_s3, 2048, %s45_s19, [#allocation7], %s572_s30, %s572_s30, %s573_s6  }
  0x33   :  { %564 = dma.done.wait [#allocation4], 384  }
  0x34   :  { %565 = vsyncadd [#allocation4], 4294966912 }
  0x35   :  { %566 = dma.done.wait [#allocation7], 2560  }
  0x36   :  { %567 = vsyncadd [#allocation7], 4294964736  ;;  %v575_v0 = vmov 0.0|0.0   ;;  %vm576_vm0 = vmmov 0   ;;  %v577_v1 = vmov 0.0   ;;  %v72_v2 = vld [vmem:[#allocation6] sm:$0xff] }
  0x37   :  { %431 = vmatprep.subr.bf16.mxu0 %v575_v0  ;;  %381 = vmatprep.mubr.msk.f32.mxu0 %vm576_vm0, %v577_v1  ;;  %v73_v3 = vld [vmem:[#allocation6 + $0x8] sm:$0xff]  ;;  %v74_v4 = vld [vmem:[#allocation6 + $0x10] sm:$0xff]  ;;  %v75_v6 = vld [vmem:[#allocation6 + $0x18] sm:$0xff]  ;;  %vm83_vm1 = vcmask 261120   ;;  %s578_s8 = smov [#allocation9]  }
  0x38   :  { %437 = vmatprep.subr.bf16.mxu1 %v575_v0  ;;  %422 = vmatprep.mubr.msk.f32.mxu1 %vm576_vm0, %v577_v1  ;;  %v432_v5 = vpack.c.bf16 %v73_v3, %v72_v2  ;;  %v203_v7 = vld [vmem:[#allocation8] sm:$0xff]  ;;  %v204_v8 = vld [vmem:[#allocation8 + $0x8] sm:$0xff]  ;;  %v435_v9 = vpack.c.bf16 %v75_v6, %v74_v4  ;;  %v70_v12 = vld [vmem:[#allocation3 + $0x8] sm:$0xff]  ;;  %s329_s9 = sshll.u32 %s578_s8, 4  ;;  %s330_s9 = int_to_ptr.vmem [resolvable:$true] %s329_s9 }
  0x39   :  { %v438_v10 = vpack.c.bf16 %v204_v8, %v203_v7  ;;  %v69_v11 = vld [vmem:[#allocation3] sm:$0xff]  ;;  %v71_v13 = vld [vmem:[#allocation3 + $0x10] sm:$0xff]  ;;  %v205_v14 = vld [vmem:[#allocation8 + $0x10] sm:$0xff]  ;;  %s542_s10 = scalar_lea.vmem %s330_s9, 384  ;;  %p547_p11 = scmp.lt.s32.totalorder %s330_s9, %s330_s9 }
  0x3a   :  { %433 = vmatpush3.bf16.msra.mxu0 %v432_v5  ;;  %v206_v15 = vld [vmem:[#allocation8 + $0x18] sm:$0xff]  ;;  %v207_v17 = vld [vmem:[#allocation8 + $0x20] sm:$0xff]  ;;  %v208_v18 = vld [vmem:[#allocation8 + $0x28] sm:$0xff]  ;;  %p543_p10 = scmp.ne.s32.totalorder %s330_s9, %s542_s10  ;;  %p548_p12 = scmp.lt.s32.totalorder %s542_s10, %s542_s10 }
  0x3b   :  { %434 = vmatprep.subr.bf16.mxu0 %v575_v0  ;;  %439 = vmatpush3.bf16.msra.mxu1 %v438_v10  ;;  %v441_v16 = vpack.c.bf16 %v206_v15, %v205_v14  ;;  %v444_v19 = vpack.c.bf16 %v208_v18, %v207_v17  ;;  %v209_v20 = vld [vmem:[#allocation8 + $0x30] sm:$0xff]  ;;  %v210_v21 = vld [vmem:[#allocation8 + $0x38] sm:$0xff]  ;;  %v211_v23 = vld [vmem:[#allocation8 + $0x40] sm:$0xff] }
  0x3c   :  { %440 = vmatprep.subr.bf16.mxu1 %v575_v0  ;;  %v447_v22 = vpack.c.bf16 %v210_v21, %v209_v20  ;;  %v212_v24 = vld [vmem:[#allocation8 + $0x48] sm:$0xff]  ;;  %v213_v26 = vld [vmem:[#allocation8 + $0x50] sm:$0xff]  ;;  %v214_v27 = vld [vmem:[#allocation8 + $0x58] sm:$0xff]  ;;  %p549_p13 = por %p548_p12, %p547_p11 }
  0x3d   :  { %v450_v25 = vpack.c.bf16 %v212_v24, %v211_v23  ;;  %v453_v28 = vpack.c.bf16 %v214_v27, %v213_v26  ;;  %v215_v29 = vld [vmem:[#allocation8 + $0x60] sm:$0xff]  ;;  %v216_v30 = vld [vmem:[#allocation8 + $0x68] sm:$0xff]  ;;  %v217_v32 = vld [vmem:[#allocation8 + $0x70] sm:$0xff] }
  0x3e   :  { %436 = vmatpush3.bf16.msra.mxu0 %v435_v9  ;;  %v456_v31 = vpack.c.bf16 %v216_v30, %v215_v29  ;;  %v218_v33 = vld [vmem:[#allocation8 + $0x78] sm:$0xff]  ;;  %v342_v35 = vld [vmem:[%s696_s2] ss:$0 sm:$0xff]  ;;  %p550_p0 = pnand %p549_p13, %p543_p10 }
  0x3f   :  { %442 = vmatpush3.bf16.msra.mxu1 %v441_v16  ;;  %v459_v34 = vpack.c.bf16 %v218_v33, %v217_v32  ;;  %v346_v9 = vld [vmem:[%s698_s4] ss:$0 sm:$0xff] }
  0x40   :  { %443 = vmatprep.subr.bf16.mxu1 %v575_v0 }
  0x41   :  { %382 = vmatmul.mubr.msk.f32.vlgmr.msra.gmra.mrb[0].mxu0 %vm83_vm1, %v69_v11 }
  0x42   :  { %384 = vmatprep.mubr.msk.f32.mxu0 %vm576_vm0, %v577_v1 }
  0x43   :  { %445 = vmatpush3.bf16.msra.mxu1 %v444_v19 }
  0x44   :  { %446 = vmatprep.subr.bf16.mxu1 %v575_v0 }
  0x45   :  { %385 = vmatmul.mubr.msk.f32.gmra.mrb[2].mxu0 %vm83_vm1, %v70_v12 }
  0x46   :  { %387 = vmatprep.mubr.msk.f32.mxu0 %vm576_vm0, %v577_v1 }
  0x47   :  { %448 = vmatpush3.bf16.msra.mxu1 %v447_v22 }
  0x48   :  { %449 = vmatprep.subr.bf16.mxu1 %v575_v0 }
  0x49   :  { %388 = vmatmul.mubr.msk.f32.gmra.mrb[4].mxu0 %vm83_vm1, %v71_v13 }
  0x4b   :  { %451 = vmatpush3.bf16.msra.mxu1 %v450_v25 }
  0x4c   :  { %452 = vmatprep.subr.bf16.mxu1 %v575_v0 }
  0x4f   :  { %454 = vmatpush3.bf16.msra.mxu1 %v453_v28 }
  0x50   :  { %455 = vmatprep.subr.bf16.mxu1 %v575_v0 }
  0x53   :  { %457 = vmatpush3.bf16.msra.mxu1 %v456_v31 }
  0x54   :  { %458 = vmatprep.subr.bf16.mxu1 %v575_v0 }
  0x57   :  { %460 = vmatpush3.bf16.msra.mxu1 %v459_v34 }
 0x114   :  { %v159_v36 = vpop.f32.mrb[0].mxu0 }
 0x115   :  { %v160_v37 = vadd.f32 %v342_v35, %v159_v36  ;;  %v383_v38 = vpop.f32.mrb[1].mxu0 }
 0x117   :  { %v176_v39 = vmul.f32 0.044715, %v160_v37  ;;  %v173_v61 = vmul.f32 0.5, %v160_v37 }
 0x118   :  { %v164_v40 = vpop.f32.mrb[2].mxu0 }
 0x119   :  { %v179_v41 = vmul.f32 %v176_v39, %v160_v37  ;;  %v165_v42 = vadd.f32 %v342_v35, %v164_v40  ;;  %v386_v43 = vpop.f32.mrb[3].mxu0 }
 0x11b   :  { %v177_v44 = vmul.f32 0.044715, %v165_v42  ;;  %v182_v45 = vmul.f32 %v179_v41, %v160_v37  ;;  %v174_v2 = vmul.f32 0.5, %v165_v42 }
 0x11c   :  { %v169_v46 = vpop.f32.mrb[4].mxu0 }
 0x11d   :  { %v180_v47 = vmul.f32 %v177_v44, %v165_v42  ;;  %v170_v48 = vadd.f32 %v342_v35, %v169_v46  ;;  %v389_v49 = vpop.f32.mrb[5].mxu0  ;;  %v185_v50 = vadd.f32 %v182_v45, %v160_v37 }
 0x11f   :  { %v178_v51 = vmul.f32 0.044715, %v170_v48  ;;  %v188_v52 = vmul.f32 0.7978846, %v185_v50  ;;  %v183_v53 = vmul.f32 %v180_v47, %v165_v42  ;;  %v175_v6 = vmul.f32 0.5, %v170_v48 }
 0x121   :  { %v181_v54 = vmul.f32 %v178_v51, %v170_v48  ;;  %470 = vtanh.f32 %v188_v52  ;;  %v186_v55 = vadd.f32 %v183_v53, %v165_v42 }
 0x123   :  { %v189_v56 = vmul.f32 0.7978846, %v186_v55  ;;  %v184_v57 = vmul.f32 %v181_v54, %v170_v48 }
 0x125   :  { %472 = vtanh.f32 %v189_v56  ;;  %v187_v58 = vadd.f32 %v184_v57, %v170_v48 }
 0x127   :  { %v190_v59 = vmul.f32 0.7978846, %v187_v58 }
 0x129   :  { %474 = vtanh.f32 %v190_v59 }
 0x12b   :  { %v471_v60 = vpop.eup %470 }
 0x12c   :  { %v194_v62 = vadd.f32 1.0, %v471_v60 }
 0x12e   :  { %v197_v63 = vmul.f32 %v194_v62, %v173_v61 }
 0x12f   :  { %v473_v0 = vpop.eup %472 }
 0x130   :  { %423 = vmatmul.mubr.f32.vlgmr.msra.gmra.mrb[0].mxu1 %v197_v63  ;;  %v195_v3 = vadd.f32 1.0, %v473_v0 }
 0x131   :  { %425 = vmatprep.mubr.msk.f32.mxu1 %vm576_vm0, %v577_v1 }
 0x132   :  { %v198_v4 = vmul.f32 %v195_v3, %v174_v2 }
 0x133   :  { %v475_v5 = vpop.eup %474 }
 0x134   :  { %426 = vmatmul.mubr.f32.gmra.mrb[2].mxu1 %v198_v4  ;;  %v196_v7 = vadd.f32 1.0, %v475_v5 }
 0x135   :  { %428 = vmatprep.mubr.msk.f32.mxu1 %vm576_vm0, %v577_v1 }
 0x136   :  { %v199_v8 = vmul.f32 %v196_v7, %v175_v6 }
 0x138   :  { %429 = vmatmul.mubr.f32.gmra.mrb[4].mxu1 %v199_v8 }
 0x203   :  { %v285_v10 = vpop.f32.mrb[0].mxu1 }
 0x204   :  { %v318_v11 = vadd.f32 %v346_v9, %v285_v10  ;;  %v424_v12 = vpop.f32.mrb[1].mxu1 }
 0x206   :  { %321 = vst [vmem:[#allocation9] sm:$0xff] %v318_v11 }
 0x207   :  { %v290_v13 = vpop.f32.mrb[2].mxu1 }
 0x208   :  { %v319_v14 = vadd.f32 %v346_v9, %v290_v13  ;;  %v427_v15 = vpop.f32.mrb[3].mxu1 }
 0x20a   :  { %322 = vst [vmem:[#allocation9 + $0x8] sm:$0xff] %v319_v14 }
 0x20b   :  { %v295_v16 = vpop.f32.mrb[4].mxu1 }
 0x20c   :  { %v320_v17 = vadd.f32 %v346_v9, %v295_v16  ;;  %v430_v18 = vpop.f32.mrb[5].mxu1 }
 0x20e   :  { %323 = vst [vmem:[#allocation9 + $0x10] sm:$0xff] %v320_v17 }
 0x20f   :  { %553 = shalt.err (!%p550_p0)
}
 0x210   :  { %s554_s12 = scalar_lea.hbm %s699_s5, 384 }
 0x211   :  { %p555_p1 = scmp.ne.s32.totalorder %s699_s5, %s554_s12  ;;  %p558_p2 = scmp.lt.u32.totalorder %s554_s12, %s699_s5 }
 0x213   :  { %p560_p3 = pnand %p558_p2, %p555_p1 }
 0x215   :  { %563 = shalt.err (!%p560_p3)
}
 0x216   :  { %335 = dma.vmem_to_hbm [thread:$0]  %s330_s9, 384, %s699_s5, [#allocation5], %s572_s30, %s572_s30, %s573_s6  }
 0x217   :  { %568 = dma.done.wait [#allocation5], 384  }
 0x218   :  { %569 = vsyncadd [#allocation5], 4294966912 }
 0x219   :  { %339 = vsyncpa [#allocation4], 1 }
 0x21a   :  { %340 = vsyncpa [#allocation7], 1 }
 0x21b   :  { %341 = vsyncpa [#allocation5], 1 }

</bundles_post_ra>
